<compile_context>
chip_gen: v5e
topology: v5e:2x2
jax: 0.10.0
libtpu: 0.0.40
codegen_flags: <defaults>
</compile_context>

<pallas_src>
import functools

import jax
import jax.numpy as jnp
import numpy as np
from jax import lax
from jax.experimental import pallas as pl
from jax.experimental.pallas import tpu as pltpu


# ----------------------------------------------------------------------------
# pltpu.roll shift-convention calibration.  One tiny probe kernel, cached per
# process, evaluated eagerly (ensure_compile_time_eval keeps it safe even if
# first hit during tracing).
# ----------------------------------------------------------------------------
@functools.lru_cache(maxsize=None)
def _roll_sign():
    def _probe(x_ref, o_ref):
        o_ref[...] = pltpu.roll(x_ref[...], 1, axis=1)

    with jax.ensure_compile_time_eval():
        x = lax.broadcasted_iota(jnp.int32, (8, 128), 1)
        y = pl.pallas_call(
            _probe, out_shape=jax.ShapeDtypeStruct((8, 128), jnp.int32))(x)
        first = int(np.asarray(y)[0, 0])
    # numpy convention (out[i] = in[i-shift]) => first element becomes 127.
    return -1 if first == 127 else 1


def _shift_minor(x, s, n):
    """y[:, p] = x[:, (p + s) % n] — lane-axis rotation on the XLU."""
    if s % n == 0:
        return x
    return pltpu.roll(x, (_roll_sign() * s) % n, axis=1)


# ----------------------------------------------------------------------------
# In-kernel helpers: iota-generated border masks + tap-major 3x3 patches for
# the flatten+roll conv trick (H*W on the 128-lane minor axis).
# ----------------------------------------------------------------------------
def _tap_masks(H, W):
    """List of 9 (1, H*W) f32 masks (None for the centre tap)."""
    HW = H * W
    idx = lax.broadcasted_iota(jnp.int32, (1, HW), 1)
    row = idx // W
    col = idx - row * W
    masks = []
    for k in range(9):
        dh, dw = k // 3 - 1, k % 3 - 1
        conds = []
        if dh == -1:
            conds.append(row >= 1)
        elif dh == 1:
            conds.append(row <= H - 2)
        if dw == -1:
            conds.append(col >= 1)
        elif dw == 1:
            conds.append(col <= W - 2)
        if not conds:
            masks.append(None)
        else:
            m = conds[0]
            for c in conds[1:]:
                m = jnp.logical_and(m, c)
            masks.append(m.astype(jnp.float32))
    return masks


def _conv_patches(x, masks, W):
    """x: (C, H*W) f32 -> (9*C, H*W) tap-major shifted/masked 3x3 patches."""
    _, HW = x.shape
    pieces = []
    for k in range(9):
        dh, dw = k // 3 - 1, k % 3 - 1
        s = dh * W + dw
        xk = _shift_minor(x, s, HW)
        if masks[k] is not None:
            xk = xk * masks[k]
        pieces.append(xk)
    return jnp.concatenate(pieces, axis=0)


# ----------------------------------------------------------------------------
# The fused kernel: one grid step == one sample.
# ----------------------------------------------------------------------------
def _projector_kernel(x_ref, u1_ref, u2_ref, w1_ref, b1_ref, w2_ref, b2_ref,
                      w3_ref, b3_ref, word_ref, wt_ref, bt_ref, o_ref,
                      *, H1, W1, H2, W2, CP):
    # --- upsample #1: 2x bilinear as one matmul on the flattened spatial axis
    x1 = jnp.dot(x_ref[0], u1_ref[...],
                 preferred_element_type=jnp.float32)              # (C2, HW1)

    # --- conv3x3 (folded BN) + ReLU #1: single K = 9*C2 MXU matmul
    m1 = _tap_masks(H1, W1)
    p1 = _conv_patches(x1, m1, W1).astype(jnp.bfloat16)           # (9*C2, HW1)
    y1 = jnp.dot(w1_ref[...], p1, preferred_element_type=jnp.float32)
    y1 = jnp.maximum(y1 + b1_ref[...], 0.0)                       # (C2, HW1)

    # --- upsample #2
    x2 = jnp.dot(y1, u2_ref[...],
                 preferred_element_type=jnp.float32)              # (C2, HW2)

    # --- conv3x3 (folded BN) + ReLU #2 (output rows zero-padded to CP)
    m2 = _tap_masks(H2, W2)
    p2 = _conv_patches(x2, m2, W2).astype(jnp.bfloat16)           # (9*C2, HW2)
    y2 = jnp.dot(w2_ref[...], p2, preferred_element_type=jnp.float32)
    y2 = jnp.maximum(y2 + b2_ref[...], 0.0)                       # (CP, HW2)

    # --- conv1x1 + bias (f32); padded rows remain exactly zero
    z = jnp.dot(w3_ref[...], y2,
                preferred_element_type=jnp.float32) + b3_ref[...]  # (CP, HW2)

    # --- txt Linear (per sample).  wt/bt are pre-permuted to tap-major with
    #     the channel axis padded to CP, so the output row is directly the
    #     dyn-conv matvec weight vector (last column = per-sample bias).
    wd = jnp.dot(word_ref[0], wt_ref[...],
                 preferred_element_type=jnp.float32) + bt_ref[...]  # (1, 9CP+1)
    w_dyn = wd[:, : 9 * CP]                                         # (1, 9*CP)
    b_dyn = wd[:, 9 * CP: 9 * CP + 1]                               # (1, 1)

    # --- per-sample dynamic 3x3 conv as one MXU matvec over z-patches
    p3 = _conv_patches(z, m2, W2)                                   # (9*CP, HW2)
    out = jnp.dot(w_dyn, p3, preferred_element_type=jnp.float32) + b_dyn
    o_ref[0] = out.astype(o_ref.dtype)                              # (1, HW2)


def projector_forward(x_nchw, word, p):
    """Pallas path.  Takes / returns NCHW like the PyTorch module."""
    B, C2, H0, W0 = x_nchw.shape
    H1, W1, H2, W2 = 2 * H0, 2 * W0, 4 * H0, 4 * W0
    HW0, HW1, HW2 = H0 * W0, H1 * W1, H2 * W2
    CP = p['w2k'].shape[0]          # padded (sublane-aligned) channel count
    WD = word.shape[1]
    NL = p['wtk'].shape[1]          # 9*CP + 1

    x_flat = x_nchw.astype(jnp.float32).reshape(B, C2, HW0)
    word3 = word.astype(jnp.float32).reshape(B, 1, WD)

    out = pl.pallas_call(
        functools.partial(_projector_kernel, H1=H1, W1=W1, H2=H2, W2=W2, CP=CP),
        out_shape=jax.ShapeDtypeStruct((B, 1, HW2), jnp.float32),
        grid=(B,),
        in_specs=[
            pl.BlockSpec((1, C2, HW0), lambda b: (b, 0, 0)),   # x (per sample)
            pl.BlockSpec((HW0, HW1), lambda b: (0, 0)),        # upsample mat 1
            pl.BlockSpec((HW1, HW2), lambda b: (0, 0)),        # upsample mat 2
            pl.BlockSpec((C2, 9 * C2), lambda b: (0, 0)),      # conv1 w (bf16)
            pl.BlockSpec((C2, 1), lambda b: (0, 0)),           # conv1 bias
            pl.BlockSpec((CP, 9 * C2), lambda b: (0, 0)),      # conv2 w (bf16)
            pl.BlockSpec((CP, 1), lambda b: (0, 0)),           # conv2 bias
            pl.BlockSpec((CP, CP), lambda b: (0, 0)),          # conv1x1 w
            pl.BlockSpec((CP, 1), lambda b: (0, 0)),           # conv1x1 bias
            pl.BlockSpec((1, 1, WD), lambda b: (b, 0, 0)),     # word (per sample)
            pl.BlockSpec((WD, NL), lambda b: (0, 0)),          # txt Linear w
            pl.BlockSpec((1, NL), lambda b: (0, 0)),           # txt Linear b
        ],
        out_specs=pl.BlockSpec((1, 1, HW2), lambda b: (b, 0, 0)),
        compiler_params=pltpu.CompilerParams(
            dimension_semantics=("parallel",),     # B=2 -> both v7x TCs busy
            vmem_limit_bytes=32 * 1024 * 1024,
        ),
    )(x_flat, p['u1'], p['u2'], p['w1k'], p['b1k'], p['w2k'], p['b2k'],
      p['w3k'], p['b3k'], word3, p['wtk'], p['btk'])
    return out.reshape(B, 1, H2, W2)


# ----------------------------------------------------------------------------
# Host-built 2x bilinear upsample matrices (align_corners=False) acting on the
# flattened row-major spatial axis:  out_flat = x_flat @ U.
# ----------------------------------------------------------------------------
def _upsample_matrix_1d(n):
    m = np.zeros((n, 2 * n), np.float32)
    for i in range(n):
        m[max(i - 1, 0), 2 * i] += 0.25
        m[i, 2 * i] += 0.75
        m[i, 2 * i + 1] += 0.75
        m[min(i + 1, n - 1), 2 * i + 1] += 0.25
    return m


def _upsample_matrix_2d(h, w):
    # U[r*w + c, R*(2w) + C] = Uh[r, R] * Uw[c, C]
    return np.kron(_upsample_matrix_1d(h), _upsample_matrix_1d(w))


# ----------------------------------------------------------------------------
# Parameter construction (deterministic, synthetic).  BatchNorm (eval mode) is
# folded into the preceding conv; kernel-layout copies are tap-major with the
# out-channel axis zero-padded to a full 8-sublane tile; OIHW f32 copies are
# kept for the pure-JAX reference.
# ----------------------------------------------------------------------------
def make_params(key, in_dim, word_dim, H0, W0):
    c2, c1 = 2 * in_dim, in_dim
    cp = ((c1 + 7) // 8) * 8                 # sublane-padded channel count
    out_dim = c1 * 9 + 1
    eps = 1e-5
    ks = jax.random.split(key, 14)

    def bn_fold(w_oihw, kidx):
        cout = w_oihw.shape[0]
        gamma = 1.0 + 0.1 * jax.random.normal(ks[kidx], (cout,), jnp.float32)
        beta = 0.1 * jax.random.normal(ks[kidx + 1], (cout,), jnp.float32)
        mean = 0.1 * jax.random.normal(ks[kidx + 2], (cout,), jnp.float32)
        var = jax.random.uniform(ks[kidx + 3], (cout,), jnp.float32, 0.5, 1.5)
        scale = gamma / jnp.sqrt(var + eps)
        return w_oihw * scale[:, None, None, None], beta - mean * scale

    wc1 = 0.1 * jax.random.normal(ks[0], (c2, c2, 3, 3), jnp.float32)
    w1_oihw, b1 = bn_fold(wc1, 1)
    wc2 = 0.1 * jax.random.normal(ks[5], (c1, c2, 3, 3), jnp.float32)
    w2_oihw, b2 = bn_fold(wc2, 6)
    w3_oihw = 0.1 * jax.random.normal(ks[10], (c1, c1, 1, 1), jnp.float32)
    b3 = 0.1 * jax.random.normal(ks[11], (c1,), jnp.float32)
    wt = 0.1 * jax.random.normal(ks[12], (out_dim, word_dim), jnp.float32)
    bt = 0.1 * jax.random.normal(ks[13], (out_dim,), jnp.float32)

    def to_tap_major(w_oihw):
        # (O, I, 3, 3) -> (O, 9*I), column index = (kh*3+kw)*I + i
        o, i = w_oihw.shape[0], w_oihw.shape[1]
        return jnp.transpose(w_oihw, (0, 2, 3, 1)).reshape(o, 9 * i)

    # conv2 / conv1x1 padded to cp output rows (padded rows are exactly zero,
    # so every patch piece downstream is an aligned (8, HW) tile).
    w2k = jnp.zeros((cp, 9 * c2), jnp.float32).at[:c1].set(to_tap_major(w2_oihw))
    b2k = jnp.zeros((cp, 1), jnp.float32).at[:c1, 0].set(b2)
    w3k = jnp.zeros((cp, cp), jnp.float32).at[:c1, :c1].set(w3_oihw[:, :, 0, 0])
    b3k = jnp.zeros((cp, 1), jnp.float32).at[:c1, 0].set(b3)

    # txt Linear permuted to tap-major (column k*cp + c) with zero channel
    # padding; last column is the per-sample dyn-conv bias.
    wt_t = jnp.transpose(wt)                           # (word_dim, out_dim)
    wt_np, bt_np = np.asarray(wt_t), np.asarray(bt)
    wtk = np.zeros((word_dim, 9 * cp + 1), np.float32)
    btk = np.zeros((9 * cp + 1,), np.float32)
    for k in range(9):
        for c in range(c1):
            wtk[:, k * cp + c] = wt_np[:, c * 9 + k]
            btk[k * cp + c] = bt_np[c * 9 + k]
    wtk[:, 9 * cp] = wt_np[:, c1 * 9]
    btk[9 * cp] = bt_np[c1 * 9]

    # 2x bilinear upsample matrices on the flattened spatial axis.
    u1 = _upsample_matrix_2d(H0, W0)                   # (H0*W0, 4*H0*W0)
    u2 = _upsample_matrix_2d(2 * H0, 2 * W0)           # (HW1, HW2)

    return dict(
        # fused-kernel layout
        u1=jnp.asarray(u1), u2=jnp.asarray(u2),
        w1k=to_tap_major(w1_oihw).astype(jnp.bfloat16), b1k=b1.reshape(c2, 1),
        w2k=w2k.astype(jnp.bfloat16), b2k=b2k,
        w3k=w3k, b3k=b3k,
        wtk=jnp.asarray(wtk), btk=jnp.asarray(btk).reshape(1, -1),
        # OIHW f32 copies for the pure-JAX reference
        w1_oihw=w1_oihw, b1=b1, w2_oihw=w2_oihw, b2=b2,
        w3_oihw=w3_oihw, b3=b3, wt=wt_t, bt=bt,
    )


# ----------------------------------------------------------------------------
# Pure-JAX reference (mirrors the PyTorch forward, eval-mode BN folded).
# ----------------------------------------------------------------------------
def _upsample2x_1d(x, axis):
    n = x.shape[axis]
    first = lax.slice_in_dim(x, 0, 1, axis=axis)
    last = lax.slice_in_dim(x, n - 1, n, axis=axis)
    left = jnp.concatenate([first, lax.slice_in_dim(x, 0, n - 1, axis=axis)], axis=axis)
    right = jnp.concatenate([lax.slice_in_dim(x, 1, n, axis=axis), last], axis=axis)
    even = 0.25 * left + 0.75 * x
    odd = 0.75 * x + 0.25 * right
    out = jnp.stack([even, odd], axis=axis + 1)
    new_shape = list(x.shape)
    new_shape[axis] = 2 * n
    return out.reshape(new_shape)


def upsample2x_bilinear(x, h_axis, w_axis):
    return _upsample2x_1d(_upsample2x_1d(x, h_axis), w_axis)


def ref_forward(x_nchw, word, p):
    dn = ('NCHW', 'OIHW', 'NCHW')
    hp = jax.lax.Precision.HIGHEST

    def conv(x, w, b, pad, relu, groups=1):
        y = lax.conv_general_dilated(x, w, (1, 1), [(pad, pad), (pad, pad)],
                                     dimension_numbers=dn,
                                     feature_group_count=groups, precision=hp)
        y = y + b[None, :, None, None]
        return jnp.maximum(y, 0.0) if relu else y

    x = x_nchw.astype(jnp.float32)
    x = upsample2x_bilinear(x, 2, 3)
    x = conv(x, p['w1_oihw'], p['b1'], 1, True)
    x = upsample2x_bilinear(x, 2, 3)
    x = conv(x, p['w2_oihw'], p['b2'], 1, True)
    x = conv(x, p['w3_oihw'], p['b3'], 0, False)
    B, C, H, W = x.shape
    xg = x.reshape(1, B * C, H, W)
    wd = jnp.dot(word.astype(jnp.float32), p['wt'], precision=hp) + p['bt']
    weight = wd[:, :-1].reshape(B, C, 3, 3)
    bias = wd[:, -1]
    out = conv(xg, weight, bias, 1, False, groups=B)
    return jnp.transpose(out, (1, 0, 2, 3))


if __name__ == "__main__":
    B, IN_DIM, WORD_DIM, H0, W0 = 2, 4, 32, 8, 8

    key = jax.random.PRNGKey(0)
    kx, kw, kp = jax.random.split(key, 3)
    x = jax.random.normal(kx, (B, 2 * IN_DIM, H0, W0), jnp.float32)   # NCHW
    word = jax.random.normal(kw, (B, WORD_DIM), jnp.float32)
    params = make_params(kp, IN_DIM, WORD_DIM, H0, W0)

    _roll_sign()  # one-time pltpu.roll convention calibration, outside jit

    out = jax.block_until_ready(jax.jit(projector_forward)(x, word, params))
    ref = jax.block_until_ready(ref_forward(x, word, params))

    assert out.shape == (B, 1, 4 * H0, 4 * W0), out.shape
    assert np.all(np.isfinite(np.asarray(out)))
    assert np.allclose(np.asarray(out), np.asarray(ref), rtol=2e-2, atol=2e-2), \
        "Pallas output does not match reference"
    print("KERNEL_OK")
</pallas_src>

<mosaic_0001>
module attributes {stable_mosaic.version = 11 : i64} {
  func.func @_probe(%arg0: memref<8x128xi32, #tpu.memory_space<vmem>>, %arg1: memref<8x128xi32, #tpu.memory_space<vmem>>) attributes {dimension_semantics = [], scalar_prefetch = 0 : i64, scratch_operands = 0 : i64, tpu.core_type = #tpu.core_type<tc>} {
    %c0 = arith.constant 0 : index
    %c0_0 = arith.constant 0 : index
    %0 = vector.load %arg0[%c0, %c0_0] : memref<8x128xi32, #tpu.memory_space<vmem>>, vector<8x128xi32>
    %c1_i32 = arith.constant 1 : i32
    %1 = tpu.dynamic_rotate %0 by %c1_i32 dim 1 : vector<8x128xi32>, i32 -> vector<8x128xi32>
    %c0_1 = arith.constant 0 : index
    %c0_2 = arith.constant 0 : index
    %2 = vector.load %arg1[%c0_1, %c0_2] : memref<8x128xi32, #tpu.memory_space<vmem>>, vector<8x128xi32>
    tpu.vector_store %arg1[%c0_1, %c0_2], %1 {strides = array<i32>} : memref<8x128xi32, #tpu.memory_space<vmem>>, vector<8x128xi32>,
    return
  }
}

</mosaic_0001>

<bundles_post_ra>
// kernel: tpu_custom_call.1
= control target key start
LH: loop header
LB: loop body
LE: loop exit
PB: predicated region body
PF: predicated region fallthrough
CT: control target
= control target key end

     0   :  { %6 = vsyncpa [#allocation3], 0  ;;  %s118_s0 = inlined_call_operand.hbm [shape: s32[8,128], index: 0, kind: input, shape index: {}]   ;;  %s119_s1 = inlined_call_operand.hbm [shape: s32[8,128], index: 1, kind: output, shape index: {}]  }
   0x1   :  { %7 = vsyncpa [#allocation4], 0  ;;  %s13_s8 = sshll.u32 %s118_s0, 4  ;;  %s99_s9 = smov [#allocation2]   ;;  %s14_s8 = int_to_ptr.hbm [resolvable:$true] %s13_s8 }
   0x2   :  { %s15_s10 = sshll.u32 %s99_s9, 4  ;;  %s16_s10 = int_to_ptr.vmem [resolvable:$true] %s15_s10 }
   0x3   :  { %18 = dma.hbm_to_vmem [thread:$0]  %s14_s8, 128, %s16_s10, [#allocation3]  }
   0x4   :  { %95 = dma.done.wait [#allocation3], 128  }
   0x5   :  { %96 = vsyncadd [#allocation3], 4294967168  ;;  %v23_v0 = vld [vmem:[#allocation2] sm:$0xff]  ;;  %s100_s11 = smov 1   ;;  %s101_s12 = smov [#allocation5]  }
   0x6   :  { %24 = vrot.lane.b32.xlu0 %v23_v0, %s100_s11  ;;  %s32_s13 = sshll.u32 %s101_s12, 4  ;;  %s34_s16 = sshll.u32 %s119_s1, 4  ;;  %s33_s13 = int_to_ptr.vmem [resolvable:$true] %s32_s13  ;;  %s35_s16 = int_to_ptr.hbm [resolvable:$true] %s34_s16 }
  0x78   :  { %v25_v1 = vpop.permute.xlu0 %24 }
  0x79   :  { %26 = vst [vmem:[#allocation5] sm:$0xff] %v25_v1 }
  0x7a   :  { %37 = dma.vmem_to_hbm [thread:$0]  %s33_s13, 128, %s35_s16, [#allocation4]  }
  0x7b   :  { %97 = dma.done.wait [#allocation4], 128  }
  0x7c   :  { %98 = vsyncadd [#allocation4], 4294967168 }
  0x7d   :  { %42 = vsyncpa [#allocation3], 1 }
  0x7e   :  { %43 = vsyncpa [#allocation4], 1 }

</bundles_post_ra>
